<compile_context>
chip_gen: v7x
topology: tpu7x:2x2x1
jax: 0.10.0
libtpu: 0.0.40
codegen_flags: <defaults>
</compile_context>

<pallas_src>
import functools

import jax
import jax.numpy as jnp
from jax.experimental import pallas as pl
from jax.experimental.pallas import tpu as pltpu


def _pick_tile(dim, candidates):
    """Largest candidate that evenly divides `dim`, else the full dim."""
    for c in candidates:
        if dim % c == 0:
            return c
    return dim


# ----------------------------------------------------------------------------
# Kernel 1: tiled matmul + bias (q / kv linear layers)
# ----------------------------------------------------------------------------
def _matmul_bias_kernel(x_ref, w_ref, b_ref, o_ref, acc_ref):
    k = pl.program_id(2)

    @pl.when(k == 0)
    def _():
        acc_ref[...] = jnp.zeros_like(acc_ref)

    acc_ref[...] += jnp.dot(x_ref[...], w_ref[...],
                            preferred_element_type=jnp.float32)

    @pl.when(k == pl.num_programs(2) - 1)
    def _():
        o_ref[...] = (acc_ref[...]
                      + b_ref[...].astype(jnp.float32)).astype(o_ref.dtype)


def matmul_bias(x, w, b):
    """y = x @ w + b.  x: (M, K), w: (K, Nout), b: (Nout,)."""
    M, K = x.shape
    _, Nout = w.shape
    tm = _pick_tile(M, (256, 128, 64, 32, 16, 8))
    tn = _pick_tile(Nout, (256, 128))
    tk = _pick_tile(K, (512, 256, 128))
    grid = (M // tm, Nout // tn, K // tk)
    return pl.pallas_call(
        _matmul_bias_kernel,
        out_shape=jax.ShapeDtypeStruct((M, Nout), x.dtype),
        grid_spec=pltpu.PrefetchScalarGridSpec(
            num_scalar_prefetch=0,
            grid=grid,
            in_specs=[
                pl.BlockSpec((tm, tk), lambda i, j, k: (i, k)),
                pl.BlockSpec((tk, tn), lambda i, j, k: (k, j)),
                pl.BlockSpec((1, tn), lambda i, j, k: (0, j)),
            ],
            out_specs=pl.BlockSpec((tm, tn), lambda i, j, k: (i, j)),
            scratch_shapes=[pltpu.VMEM((tm, tn), jnp.float32)],
        ),
        compiler_params=pltpu.CompilerParams(
            dimension_semantics=("parallel", "parallel", "arbitrary")),
    )(x, w, b.reshape(1, Nout))


# ----------------------------------------------------------------------------
# Kernel 2: spatial reduction (strided sr x sr conv as patch matmul) + LayerNorm
# ----------------------------------------------------------------------------
def _sr_ln_kernel(x_ref, w_ref, b_ref, g_ref, bt_ref, o_ref, acc_ref, *, eps):
    k = pl.program_id(1)

    @pl.when(k == 0)
    def _():
        acc_ref[...] = jnp.zeros_like(acc_ref)

    acc_ref[...] += jnp.dot(x_ref[...], w_ref[...],
                            preferred_element_type=jnp.float32)

    @pl.when(k == pl.num_programs(1) - 1)
    def _():
        y = acc_ref[...] + b_ref[...].astype(jnp.float32)
        mu = jnp.mean(y, axis=-1, keepdims=True)
        var = jnp.mean(jnp.square(y - mu), axis=-1, keepdims=True)
        yn = (y - mu) * jax.lax.rsqrt(var + eps)
        o_ref[...] = (yn * g_ref[...].astype(jnp.float32)
                      + bt_ref[...].astype(jnp.float32)).astype(o_ref.dtype)


def sr_layernorm(x_patches, w2d, b, gamma, beta, *, eps=1e-5):
    """(x_patches @ w2d + b) followed by LayerNorm over the channel axis.

    x_patches: (M, K) with K = sr*sr*C (flattened patches), w2d: (K, C).
    The output block spans the full channel width so LayerNorm can be fused
    into the matmul epilogue (no extra HBM round trip for the reduced tokens).
    """
    M, K = x_patches.shape
    _, C = w2d.shape
    tm = _pick_tile(M, (256, 128, 64, 32, 16, 8))
    tk = _pick_tile(K, (512, 256, 128))
    grid = (M // tm, K // tk)
    kernel = functools.partial(_sr_ln_kernel, eps=eps)
    return pl.pallas_call(
        kernel,
        out_shape=jax.ShapeDtypeStruct((M, C), x_patches.dtype),
        grid_spec=pltpu.PrefetchScalarGridSpec(
            num_scalar_prefetch=0,
            grid=grid,
            in_specs=[
                pl.BlockSpec((tm, tk), lambda i, k: (i, k)),
                pl.BlockSpec((tk, C), lambda i, k: (k, 0)),
                pl.BlockSpec((1, C), lambda i, k: (0, 0)),
                pl.BlockSpec((1, C), lambda i, k: (0, 0)),
                pl.BlockSpec((1, C), lambda i, k: (0, 0)),
            ],
            out_specs=pl.BlockSpec((tm, C), lambda i, k: (i, 0)),
            scratch_shapes=[pltpu.VMEM((tm, C), jnp.float32)],
        ),
        compiler_params=pltpu.CompilerParams(
            dimension_semantics=("parallel", "arbitrary")),
    )(x_patches, w2d, b.reshape(1, C), gamma.reshape(1, C), beta.reshape(1, C))


# ----------------------------------------------------------------------------
# Kernel 3: multi-head attention + output projection, fused
#   grid = (B, q-blocks); whole kv block stays resident per step (PVTv2's
#   spatial reduction keeps Nkv small), head split/merge done in-kernel on
#   the lane axis, proj matmul fused into the epilogue -> lane-dense (tq, C)
#   store and no pre-proj (B, N, C) HBM round trip.
# ----------------------------------------------------------------------------
def _attn_proj_kernel(q_ref, kv_ref, wp_ref, bp_ref, o_ref, *, num_heads, scale):
    C = q_ref.shape[2]
    dh = C // num_heads
    qt = q_ref[0]                      # (tq, C)
    kvt = kv_ref[0]                    # (Nkv, 2C) -> [k | v] channels, (head, dh)
    head_outs = []
    for h in range(num_heads):
        lo = h * dh
        qh = qt[:, lo:lo + dh]                 # (tq, dh)
        kh = kvt[:, lo:lo + dh]                # (Nkv, dh)
        vh = kvt[:, C + lo:C + lo + dh]        # (Nkv, dh)
        # scores = qh @ kh^T * scale   (contract over dh on the MXU, f32 acc)
        s = jax.lax.dot_general(qh, kh, (((1,), (1,)), ((), ())),
                                preferred_element_type=jnp.float32) * scale
        s = s - jnp.max(s, axis=-1, keepdims=True)
        p = jnp.exp(s)
        p = p / jnp.sum(p, axis=-1, keepdims=True)
        head_outs.append(jnp.dot(p.astype(vh.dtype), vh,
                                 preferred_element_type=jnp.float32))
    o = jnp.concatenate(head_outs, axis=-1)     # (tq, C) — heads merged on lanes
    # fused output projection
    o = jnp.dot(o.astype(wp_ref.dtype), wp_ref[...],
                preferred_element_type=jnp.float32)
    o_ref[0] = (o + bp_ref[...].astype(jnp.float32)).astype(o_ref.dtype)


def attention_proj(q, kv, wproj, bproj, *, num_heads, scale):
    """q: (B, N, C); kv: (B, Nkv, 2C); wproj: (C, C); bproj: (C,) -> (B, N, C).

    PVTv2's spatial reduction keeps Nkv small (~(H/sr)*(W/sr)), so the full kv
    block stays resident per grid step and a plain softmax is exact.
    """
    # TODO(synk): for sr_ratio == 1 with very long sequences, switch to an
    # online-softmax kv loop (flash-style) instead of a single resident block.
    B, N, C = q.shape
    _, Nkv, _ = kv.shape
    tq = _pick_tile(N, (128, 64, 32, 16, 8))
    kernel = functools.partial(_attn_proj_kernel, num_heads=num_heads, scale=scale)
    return pl.pallas_call(
        kernel,
        out_shape=jax.ShapeDtypeStruct((B, N, C), q.dtype),
        grid_spec=pltpu.PrefetchScalarGridSpec(
            num_scalar_prefetch=0,
            grid=(B, N // tq),
            in_specs=[
                pl.BlockSpec((1, tq, C), lambda b, i: (b, i, 0)),
                pl.BlockSpec((1, Nkv, 2 * C), lambda b, i: (b, 0, 0)),
                pl.BlockSpec((C, C), lambda b, i: (0, 0)),
                pl.BlockSpec((1, C), lambda b, i: (0, 0)),
            ],
            out_specs=pl.BlockSpec((1, tq, C), lambda b, i: (b, i, 0)),
        ),
        compiler_params=pltpu.CompilerParams(
            dimension_semantics=("parallel", "parallel")),
    )(q, kv, wproj, bproj.reshape(1, C))


# ----------------------------------------------------------------------------
# Full PVTv2 Attention forward (wrapper: layout plumbing only, compute in Pallas)
# ----------------------------------------------------------------------------
def pvt_attention(x, H, W, params, *, num_heads, sr_ratio, ln_eps=1e-5):
    """x: (B, N, C) with N == H*W.  Linear weights stored (in, out) = PyTorch W^T;
    the sr conv weight is HWIO (= PyTorch OIHW transposed (2, 3, 1, 0))."""
    B, N, C = x.shape
    assert N == H * W and C % num_heads == 0
    dh = C // num_heads
    scale = float(dh) ** -0.5

    # q = Linear(x)  (kept in (B, N, C); per-head lane slicing happens in-kernel)
    q = matmul_bias(x.reshape(B * N, C), params["wq"], params["bq"])
    q = q.reshape(B, N, C)

    # k/v source: spatial reduction + LayerNorm (or identity when sr_ratio == 1)
    if sr_ratio > 1:
        assert H % sr_ratio == 0 and W % sr_ratio == 0
        Hs, Ws = H // sr_ratio, W // sr_ratio
        Nkv = Hs * Ws
        # strided sr x sr conv == per-patch dense matmul; patch extraction is
        # pure layout plumbing done here in XLA.
        patches = x.reshape(B, Hs, sr_ratio, Ws, sr_ratio, C)
        patches = patches.transpose(0, 1, 3, 2, 4, 5)
        patches = patches.reshape(B * Nkv, sr_ratio * sr_ratio * C)
        w_sr2d = params["w_sr"].reshape(sr_ratio * sr_ratio * C, C)
        x_kv = sr_layernorm(patches, w_sr2d, params["b_sr"],
                            params["ln_gamma"], params["ln_beta"], eps=ln_eps)
    else:
        Nkv = N
        x_kv = x.reshape(B * N, C)

    # kv = Linear(x_kv); channels are laid out [k(head,dh) | v(head,dh)], so
    # the attention kernel slices heads directly on the lane axis (no XLA
    # split/permute of k and v).
    kv = matmul_bias(x_kv, params["wkv"], params["bkv"])            # (B*Nkv, 2C)
    kv = kv.reshape(B, Nkv, 2 * C)

    # attention + head merge + output projection, all fused
    out = attention_proj(q, kv, params["wproj"], params["bproj"],
                         num_heads=num_heads, scale=scale)
    return out


# ----------------------------------------------------------------------------
# Pure-JAX reference (mirrors the PyTorch module) for correctness checking
# ----------------------------------------------------------------------------
def _reference_attention(x, H, W, params, *, num_heads, sr_ratio, ln_eps=1e-5):
    hp = jax.lax.Precision.HIGHEST
    B, N, C = x.shape
    dh = C // num_heads
    scale = float(dh) ** -0.5

    q = jnp.dot(x, params["wq"], precision=hp) + params["bq"]
    q = q.reshape(B, N, num_heads, dh).transpose(0, 2, 1, 3)

    if sr_ratio > 1:
        x_img = x.reshape(B, H, W, C)
        xs = jax.lax.conv_general_dilated(
            x_img, params["w_sr"], window_strides=(sr_ratio, sr_ratio),
            padding="VALID", dimension_numbers=("NHWC", "HWIO", "NHWC"),
            precision=hp) + params["b_sr"]
        xs = xs.reshape(B, -1, C)
        mu = xs.mean(-1, keepdims=True)
        var = jnp.mean((xs - mu) ** 2, axis=-1, keepdims=True)
        xs = (xs - mu) / jnp.sqrt(var + ln_eps)
        xs = xs * params["ln_gamma"] + params["ln_beta"]
    else:
        xs = x

    kv = jnp.dot(xs, params["wkv"], precision=hp) + params["bkv"]
    Nkv = kv.shape[1]
    kv = kv.reshape(B, Nkv, 2, num_heads, dh).transpose(2, 0, 3, 1, 4)
    k, v = kv[0], kv[1]

    attn = jnp.einsum("bhqd,bhkd->bhqk", q, k, precision=hp) * scale
    attn = jax.nn.softmax(attn, axis=-1)
    o = jnp.einsum("bhqk,bhkd->bhqd", attn, v, precision=hp)
    o = o.transpose(0, 2, 1, 3).reshape(B, N, C)
    return jnp.dot(o, params["wproj"], precision=hp) + params["bproj"]


if __name__ == "__main__":
    B, H, W = 2, 8, 8
    dim, num_heads, sr_ratio = 128, 2, 2
    N = H * W

    key = jax.random.PRNGKey(0)
    ks = jax.random.split(key, 11)
    s = 0.05
    x = jax.random.normal(ks[0], (B, N, dim), dtype=jnp.float32)
    params = {
        # nn.Linear weights stored as (in, out) == PyTorch weight^T
        "wq": jax.random.normal(ks[1], (dim, dim), jnp.float32) * s,
        "bq": jax.random.normal(ks[2], (dim,), jnp.float32) * s,
        "wkv": jax.random.normal(ks[3], (dim, 2 * dim), jnp.float32) * s,
        "bkv": jax.random.normal(ks[4], (2 * dim,), jnp.float32) * s,
        "wproj": jax.random.normal(ks[5], (dim, dim), jnp.float32) * s,
        "bproj": jax.random.normal(ks[6], (dim,), jnp.float32) * s,
        # nn.Conv2d(dim, dim, sr, stride=sr) weight in HWIO (= OIHW.transpose(2,3,1,0))
        "w_sr": jax.random.normal(ks[7], (sr_ratio, sr_ratio, dim, dim),
                                  jnp.float32) * s,
        "b_sr": jax.random.normal(ks[8], (dim,), jnp.float32) * s,
        "ln_gamma": 1.0 + 0.1 * jax.random.normal(ks[9], (dim,), jnp.float32),
        "ln_beta": 0.1 * jax.random.normal(ks[10], (dim,), jnp.float32),
    }

    # sr_ratio > 1 path (spatial reduction + LayerNorm)
    out = pvt_attention(x, H, W, params, num_heads=num_heads, sr_ratio=sr_ratio)
    out = jax.block_until_ready(out)
    ref = _reference_attention(x, H, W, params, num_heads=num_heads,
                               sr_ratio=sr_ratio)
    assert out.shape == (B, N, dim)
    assert jnp.allclose(out, ref, atol=2e-3, rtol=2e-3), (
        f"sr>1 mismatch, max abs err {jnp.max(jnp.abs(out - ref))}")

    # sr_ratio == 1 path (no spatial reduction, no LayerNorm)
    out1 = pvt_attention(x, H, W, params, num_heads=num_heads, sr_ratio=1)
    out1 = jax.block_until_ready(out1)
    ref1 = _reference_attention(x, H, W, params, num_heads=num_heads, sr_ratio=1)
    assert jnp.allclose(out1, ref1, atol=2e-3, rtol=2e-3), (
        f"sr==1 mismatch, max abs err {jnp.max(jnp.abs(out1 - ref1))}")

    print("KERNEL_OK")
</pallas_src>

<mosaic_0001>
module attributes {stable_mosaic.version = 11 : i64} {
  func.func @_matmul_bias_kernel(%arg0: i32, %arg1: i32, %arg2: i32, %arg3: memref<128x128xf32, #tpu.memory_space<vmem>>, %arg4: memref<128x128xf32, #tpu.memory_space<vmem>>, %arg5: memref<1x128xf32, #tpu.memory_space<vmem>>, %arg6: memref<128x128xf32, #tpu.memory_space<vmem>>, %arg7: memref<128x128xf32, #tpu.memory_space<vmem>>) attributes {dimension_semantics = [#tpu.dimension_semantics<parallel>, #tpu.dimension_semantics<parallel>, #tpu.dimension_semantics<arbitrary>], iteration_bounds = array<i64: 1, 1, 1>, scalar_prefetch = 0 : i64, scratch_operands = 1 : i64, tpu.core_type = #tpu.core_type<tc>, window_params = [{transform_indices = @transform_0, window_bounds = array<i64: 128, 128>}, {transform_indices = @transform_1, window_bounds = array<i64: 128, 128>}, {transform_indices = @transform_2, window_bounds = array<i64: 1, 128>}, {transform_indices = @transform_3, window_bounds = array<i64: 128, 128>}]} {
    %c0_i32 = arith.constant 0 : i32
    %0 = arith.cmpi eq, %arg2, %c0_i32 : i32
    %1 = arith.extui %0 : i1 to i32
    %c0_i32_0 = arith.constant 0 : i32
    %2 = arith.cmpi ne, %1, %c0_i32_0 : i32
    scf.if %2 {
      %cst_10 = arith.constant 0.000000e+00 : f32
      %12 = vector.broadcast %cst_10 : f32 to vector<128x128xf32>
      %c0_11 = arith.constant 0 : index
      %c0_12 = arith.constant 0 : index
      %13 = vector.load %arg7[%c0_11, %c0_12] : memref<128x128xf32, #tpu.memory_space<vmem>>, vector<128x128xf32>
      tpu.vector_store %arg7[%c0_11, %c0_12], %12 {strides = array<i32>} : memref<128x128xf32, #tpu.memory_space<vmem>>, vector<128x128xf32>,
    } else {
    }
    %c0 = arith.constant 0 : index
    %c0_1 = arith.constant 0 : index
    %3 = vector.load %arg7[%c0, %c0_1] : memref<128x128xf32, #tpu.memory_space<vmem>>, vector<128x128xf32>
    %c0_2 = arith.constant 0 : index
    %c0_3 = arith.constant 0 : index
    %4 = vector.load %arg3[%c0_2, %c0_3] : memref<128x128xf32, #tpu.memory_space<vmem>>, vector<128x128xf32>
    %c0_4 = arith.constant 0 : index
    %c0_5 = arith.constant 0 : index
    %5 = vector.load %arg4[%c0_4, %c0_5] : memref<128x128xf32, #tpu.memory_space<vmem>>, vector<128x128xf32>
    %cst = arith.constant dense<0.000000e+00> : vector<128x128xf32>
    %6 = tpu.matmul %4, %5, %cst {dimension_numbers = #tpu.dot_dimension_numbers<[1], [0], [0], [1], [0, 0, 1, 1], [], []>} : vector<128x128xf32>, vector<128x128xf32>, vector<128x128xf32> -> vector<128x128xf32>
    %7 = arith.addf %3, %6 : vector<128x128xf32>
    %c0_6 = arith.constant 0 : index
    %c0_7 = arith.constant 0 : index
    %8 = vector.load %arg7[%c0_6, %c0_7] : memref<128x128xf32, #tpu.memory_space<vmem>>, vector<128x128xf32>
    tpu.vector_store %arg7[%c0_6, %c0_7], %7 {strides = array<i32>} : memref<128x128xf32, #tpu.memory_space<vmem>>, vector<128x128xf32>,
    %c0_i32_8 = arith.constant 0 : i32
    %9 = arith.cmpi eq, %arg2, %c0_i32_8 : i32
    %10 = arith.extui %9 : i1 to i32
    %c0_i32_9 = arith.constant 0 : i32
    %11 = arith.cmpi ne, %10, %c0_i32_9 : i32
    scf.if %11 {
      %c0_10 = arith.constant 0 : index
      %c0_11 = arith.constant 0 : index
      %12 = vector.load %arg7[%c0_10, %c0_11] : memref<128x128xf32, #tpu.memory_space<vmem>>, vector<128x128xf32>
      %c0_12 = arith.constant 0 : index
      %c0_13 = arith.constant 0 : index
      %13 = vector.load %arg5[%c0_12, %c0_13] : memref<1x128xf32, #tpu.memory_space<vmem>>, vector<1x128xf32>
      %14 = vector.broadcast %13 : vector<1x128xf32> to vector<128x128xf32>
      %15 = arith.addf %12, %14 : vector<128x128xf32>
      %c0_14 = arith.constant 0 : index
      %c0_15 = arith.constant 0 : index
      %16 = vector.load %arg6[%c0_14, %c0_15] : memref<128x128xf32, #tpu.memory_space<vmem>>, vector<128x128xf32>
      tpu.vector_store %arg6[%c0_14, %c0_15], %15 {strides = array<i32>} : memref<128x128xf32, #tpu.memory_space<vmem>>, vector<128x128xf32>,
    } else {
    }
    return
  }
  func.func @transform_0(%arg0: i32, %arg1: i32, %arg2: i32) -> (i32, i32) {
    %c0_i32 = arith.constant 0 : i32
    return %arg0, %arg2 : i32, i32
  }
  func.func @transform_1(%arg0: i32, %arg1: i32, %arg2: i32) -> (i32, i32) {
    %c0_i32 = arith.constant 0 : i32
    return %arg2, %arg1 : i32, i32
  }
  func.func @transform_2(%arg0: i32, %arg1: i32, %arg2: i32) -> (i32, i32) {
    %c0_i32 = arith.constant 0 : i32
    %c0_i32_0 = arith.constant 0 : i32
    return %c0_i32, %arg1 : i32, i32
  }
  func.func @transform_3(%arg0: i32, %arg1: i32, %arg2: i32) -> (i32, i32) {
    %c0_i32 = arith.constant 0 : i32
    return %arg0, %arg1 : i32, i32
  }
}

</mosaic_0001>

<bundles_post_ra>
// kernel: tpu_custom_call.1
= control target key start
LH: loop header
LB: loop body
LE: loop exit
PB: predicated region body
PF: predicated region fallthrough
CT: control target
= control target key end

     0   :  { %8 = vsyncpa [#allocation4], 0  ;;  %s651_s0 = inlined_call_operand.hbm [shape: f32[128,128], index: 0, kind: input, shape index: {}]   ;;  %s652_s1 = inlined_call_operand.hbm [shape: f32[128,128], index: 1, kind: input, shape index: {}]   ;;  %s653_s2 = inlined_call_operand.vmem [shape: f32[1,128], index: 2, kind: input, shape index: {}]   ;;  %s654_s3 = inlined_call_operand.hbm [shape: f32[128,128], index: 3, kind: output, shape index: {}]  }
   0x1   :  { %9 = vsyncpa [#allocation7], 0 }
   0x2   :  { %10 = vsyncpa [#allocation5], 0  ;;  %s578_s12 = smov [#allocation3]   ;;  %s506_s16 = scalar_lea.hbm %s651_s0, 2048 }
   0x3   :  { %s16_s13 = sshll.u32 %s578_s12, 4  ;;  %p507_p0 = scmp.ne.s32.totalorder %s651_s0, %s506_s16  ;;  %s17_s13 = int_to_ptr.vmem [resolvable:$true] %s16_s13 }
   0x4   :  { %p510_p1 = scmp.lt.u32.totalorder %s506_s16, %s651_s0 }
   0x6   :  { %p512_p2 = pnand %p510_p1, %p507_p0 }
   0x8   :  { %515 = shalt.err (!%p512_p2)
}
   0x9   :  { %s516_s21 = scalar_lea.vmem %s17_s13, 2048  ;;  %p521_p4 = scmp.lt.s32.totalorder %s17_s13, %s17_s13 }
   0xa   :  { %p517_p3 = scmp.ne.s32.totalorder %s17_s13, %s516_s21  ;;  %p522_p5 = scmp.lt.s32.totalorder %s516_s21, %s516_s21 }
   0xc   :  { %p523_p6 = por %p522_p5, %p521_p4 }
   0xe   :  { %p524_p7 = pnand %p523_p6, %p517_p3 }
  0x10   :  { %527 = shalt.err (!%p524_p7)
}
  0x11   :  { %s579_s22 = smov 128   ;;  %s580_s23 = smov 8  }
  0x12   :  { %22 = dma.hbm_to_vmem [thread:$0]  %s651_s0, 2048, %s17_s13, [#allocation4], %s579_s22, %s579_s22, %s580_s23  }
  0x13   :  { %s581_s26 = smov [#allocation6]   ;;  %s528_s30 = scalar_lea.hbm %s652_s1, 2048 }
  0x14   :  { %s28_s27 = sshll.u32 %s581_s26, 4  ;;  %p529_p8 = scmp.ne.s32.totalorder %s652_s1, %s528_s30  ;;  %s29_s27 = int_to_ptr.vmem [resolvable:$true] %s28_s27 }
  0x15   :  { %p532_p9 = scmp.lt.u32.totalorder %s528_s30, %s652_s1 }
  0x17   :  { %p534_p10 = pnand %p532_p9, %p529_p8 }
  0x19   :  { %537 = shalt.err (!%p534_p10)
}
  0x1a   :  { %s538_s8 = scalar_lea.vmem %s29_s27, 2048  ;;  %p543_p12 = scmp.lt.s32.totalorder %s29_s27, %s29_s27 }
  0x1b   :  { %p539_p11 = scmp.ne.s32.totalorder %s29_s27, %s538_s8  ;;  %p544_p13 = scmp.lt.s32.totalorder %s538_s8, %s538_s8 }
  0x1d   :  { %p545_p0 = por %p544_p13, %p543_p12 }
  0x1f   :  { %p546_p1 = pnand %p545_p0, %p539_p11 }
  0x21   :  { %549 = shalt.err (!%p546_p1)
}
  0x22   :  { %34 = dma.hbm_to_vmem [thread:$0]  %s652_s1, 2048, %s29_s27, [#allocation7], %s579_s22, %s579_s22, %s580_s23  }
  0x23   :  { %572 = dma.done.wait [#allocation4], 2048  }
  0x24   :  { %573 = vsyncadd [#allocation4], 4294965248 }
  0x25   :  { %574 = dma.done.wait [#allocation7], 2048  }
  0x26   :  { %575 = vsyncadd [#allocation7], 4294965248  ;;  %v95_v0 = vld [vmem:[#allocation6] sm:$0xff]  ;;  %v96_v1 = vld [vmem:[#allocation6 + $0x8] sm:$0xff] }
  0x27   :  { %v97_v2 = vld [vmem:[#allocation6 + $0x10] sm:$0xff]  ;;  %v453_v3 = vpack.c.bf16 %v96_v1, %v95_v0  ;;  %v98_v4 = vld [vmem:[#allocation6 + $0x18] sm:$0xff]  ;;  %v99_v6 = vld [vmem:[#allocation6 + $0x20] sm:$0xff] }
  0x28   :  { %v457_v5 = vpack.c.bf16 %v98_v4, %v97_v2  ;;  %v100_v7 = vld [vmem:[#allocation6 + $0x28] sm:$0xff]  ;;  %v79_v9 = vld [vmem:[#allocation3] sm:$0xff]  ;;  %v101_v11 = vld [vmem:[#allocation6 + $0x30] sm:$0xff] }
  0x29   :  { %454 = vmatprep.subr.bf16.mxu0 %v453_v3  ;;  %485 = vmatprep.subr.bf16.mxu1 %v453_v3  ;;  %v461_v8 = vpack.c.bf16 %v100_v7, %v99_v6  ;;  %v87_v10 = vld [vmem:[#allocation3 + $0x40] sm:$0xff]  ;;  %v102_v12 = vld [vmem:[#allocation6 + $0x38] sm:$0xff]  ;;  %v104_v15 = vld [vmem:[#allocation6 + $0x48] sm:$0xff] }
  0x2a   :  { %456 = vmatpush3.bf16.msra.mxu0 %v453_v3  ;;  %493 = vmatpush3.bf16.msra.mxu1 %v453_v3  ;;  %v465_v13 = vpack.c.bf16 %v102_v12, %v101_v11  ;;  %v103_v14 = vld [vmem:[#allocation6 + $0x40] sm:$0xff]  ;;  %v105_v17 = vld [vmem:[#allocation6 + $0x50] sm:$0xff]  ;;  %v106_v18 = vld [vmem:[#allocation6 + $0x58] sm:$0xff] }
  0x2b   :  { %458 = vmatprep.subr.bf16.mxu0 %v457_v5  ;;  %486 = vmatprep.subr.bf16.mxu1 %v457_v5  ;;  %v469_v16 = vpack.c.bf16 %v104_v15, %v103_v14  ;;  %v473_v19 = vpack.c.bf16 %v106_v18, %v105_v17  ;;  %v107_v20 = vld [vmem:[#allocation6 + $0x60] sm:$0xff]  ;;  %v108_v21 = vld [vmem:[#allocation6 + $0x68] sm:$0xff]  ;;  %v109_v23 = vld [vmem:[#allocation6 + $0x70] sm:$0xff] }
  0x2c   :  { %429 = vmatprep.mubr.f32.mxu0 %v79_v9  ;;  %441 = vmatprep.mubr.f32.mxu1 %v87_v10  ;;  %v477_v22 = vpack.c.bf16 %v108_v21, %v107_v20  ;;  %v110_v24 = vld [vmem:[#allocation6 + $0x78] sm:$0xff]  ;;  %v80_v26 = vld [vmem:[#allocation3 + $0x8] sm:$0xff]  ;;  %v81_v28 = vld [vmem:[#allocation3 + $0x10] sm:$0xff] }
  0x2d   :  { %v481_v25 = vpack.c.bf16 %v110_v24, %v109_v23  ;;  %v88_v27 = vld [vmem:[#allocation3 + $0x48] sm:$0xff]  ;;  %v89_v29 = vld [vmem:[#allocation3 + $0x50] sm:$0xff]  ;;  %v82_v30 = vld [vmem:[#allocation3 + $0x18] sm:$0xff] }
  0x2e   :  { %460 = vmatpush3.bf16.msra.mxu0 %v457_v5  ;;  %494 = vmatpush3.bf16.msra.mxu1 %v457_v5  ;;  %v90_v31 = vld [vmem:[#allocation3 + $0x58] sm:$0xff]  ;;  %v83_v32 = vld [vmem:[#allocation3 + $0x20] sm:$0xff]  ;;  %v84_v34 = vld [vmem:[#allocation3 + $0x28] sm:$0xff] }
  0x2f   :  { %462 = vmatprep.subr.bf16.mxu0 %v461_v8  ;;  %487 = vmatprep.subr.bf16.mxu1 %v461_v8  ;;  %v91_v33 = vld [vmem:[#allocation3 + $0x60] sm:$0xff]  ;;  %v92_v35 = vld [vmem:[#allocation3 + $0x68] sm:$0xff]  ;;  %v85_v36 = vld [vmem:[#allocation3 + $0x30] sm:$0xff] }
  0x30   :  { %v93_v37 = vld [vmem:[#allocation3 + $0x70] sm:$0xff]  ;;  %v86_v38 = vld [vmem:[#allocation3 + $0x38] sm:$0xff]  ;;  %v364_v40 = vld [vmem:[%s653_s2] ss:$0 sm:$0xff]  ;;  %s582_s2 = smov [#allocation8]  }
  0x31   :  { %v94_v39 = vld [vmem:[#allocation3 + $0x78] sm:$0xff]  ;;  %s351_s11 = sshll.u32 %s582_s2, 4  ;;  %s352_s11 = int_to_ptr.vmem [resolvable:$true] %s351_s11 }
  0x32   :  { %464 = vmatpush3.bf16.msra.mxu0 %v461_v8  ;;  %495 = vmatpush3.bf16.msra.mxu1 %v461_v8  ;;  %s550_s12 = scalar_lea.vmem %s352_s11, 2048  ;;  %p555_p3 = scmp.lt.s32.totalorder %s352_s11, %s352_s11 }
  0x33   :  { %466 = vmatprep.subr.bf16.mxu0 %v465_v13  ;;  %488 = vmatprep.subr.bf16.mxu1 %v465_v13  ;;  %p551_p2 = scmp.ne.s32.totalorder %s352_s11, %s550_s12  ;;  %p556_p4 = scmp.lt.s32.totalorder %s550_s12, %s550_s12 }
  0x35   :  { %p557_p5 = por %p556_p4, %p555_p3 }
  0x36   :  { %468 = vmatpush3.bf16.msra.mxu0 %v465_v13  ;;  %496 = vmatpush3.bf16.msra.mxu1 %v465_v13 }
  0x37   :  { %470 = vmatprep.subr.bf16.mxu0 %v469_v16  ;;  %489 = vmatprep.subr.bf16.mxu1 %v469_v16  ;;  %p558_p6 = pnand %p557_p5, %p551_p2 }
  0x3a   :  { %472 = vmatpush3.bf16.msra.mxu0 %v469_v16  ;;  %497 = vmatpush3.bf16.msra.mxu1 %v469_v16 }
  0x3b   :  { %474 = vmatprep.subr.bf16.mxu0 %v473_v19  ;;  %490 = vmatprep.subr.bf16.mxu1 %v473_v19 }
  0x3e   :  { %476 = vmatpush3.bf16.msra.mxu0 %v473_v19  ;;  %498 = vmatpush3.bf16.msra.mxu1 %v473_v19 }
  0x3f   :  { %478 = vmatprep.subr.bf16.mxu0 %v477_v22  ;;  %491 = vmatprep.subr.bf16.mxu1 %v477_v22 }
  0x42   :  { %480 = vmatpush3.bf16.msra.mxu0 %v477_v22  ;;  %499 = vmatpush3.bf16.msra.mxu1 %v477_v22 }
  0x43   :  { %482 = vmatprep.subr.bf16.mxu0 %v481_v25  ;;  %492 = vmatprep.subr.bf16.mxu1 %v481_v25 }
  0x46   :  { %484 = vmatpush3.bf16.msra.mxu0 %v481_v25  ;;  %500 = vmatpush3.bf16.msra.mxu1 %v481_v25 }
  0x49   :  { %430 = vmatmul.mubr.f32.vlgmr.msra.gmra.mrb[0].mxu0 %v80_v26  ;;  %442 = vmatmul.mubr.f32.vlgmr.msra.gmra.mrb[0].mxu1 %v88_v27 }
  0x4a   :  { %432 = vmatprep.mubr.f32.mxu0 %v81_v28  ;;  %444 = vmatprep.mubr.f32.mxu1 %v89_v29 }
  0x4d   :  { %433 = vmatmul.mubr.f32.gmra.mrb[2].mxu0 %v82_v30  ;;  %445 = vmatmul.mubr.f32.gmra.mrb[2].mxu1 %v90_v31 }
  0x4e   :  { %435 = vmatprep.mubr.f32.mxu0 %v83_v32  ;;  %447 = vmatprep.mubr.f32.mxu1 %v91_v33 }
  0x51   :  { %436 = vmatmul.mubr.f32.gmra.mrb[4].mxu0 %v84_v34  ;;  %448 = vmatmul.mubr.f32.gmra.mrb[4].mxu1 %v92_v35 }
  0x52   :  { %438 = vmatprep.mubr.f32.mxu0 %v85_v36  ;;  %450 = vmatprep.mubr.f32.mxu1 %v93_v37 }
  0x55   :  { %439 = vmatmul.mubr.f32.gmra.mrb[6].mxu0 %v86_v38  ;;  %451 = vmatmul.mubr.f32.gmra.mrb[6].mxu1 %v94_v39 }
 0x11c   :  { %v431_v41 = vpop.f32.mrb[0].mxu0  ;;  %v443_v42 = vpop.f32.mrb[0].mxu1 }
 0x11d   :  { %v315_v43 = vadd.f32 %v431_v41, %v364_v40  ;;  %v323_v44 = vadd.f32 %v443_v42, %v364_v40  ;;  %v177_v45 = vpop.f32.mrb[1].mxu0  ;;  %v217_v46 = vpop.f32.mrb[1].mxu1 }
 0x11e   :  { %v314_v47 = vadd.f32 %v364_v40, %v177_v45  ;;  %v322_v48 = vadd.f32 %v364_v40, %v217_v46 }
 0x11f   :  { %331 = vst [vmem:[#allocation8 + $0x8] sm:$0xff] %v315_v43  ;;  %339 = vst [vmem:[#allocation8 + $0x48] sm:$0xff] %v323_v44 }
 0x120   :  { %330 = vst [vmem:[#allocation8] sm:$0xff] %v314_v47  ;;  %338 = vst [vmem:[#allocation8 + $0x40] sm:$0xff] %v322_v48  ;;  %v434_v49 = vpop.f32.mrb[2].mxu0  ;;  %v446_v50 = vpop.f32.mrb[2].mxu1 }
 0x121   :  { %v317_v51 = vadd.f32 %v434_v49, %v364_v40  ;;  %v325_v52 = vadd.f32 %v446_v50, %v364_v40  ;;  %v187_v53 = vpop.f32.mrb[3].mxu0  ;;  %v227_v54 = vpop.f32.mrb[3].mxu1 }
 0x122   :  { %v316_v55 = vadd.f32 %v364_v40, %v187_v53  ;;  %v324_v56 = vadd.f32 %v364_v40, %v227_v54 }
 0x123   :  { %333 = vst [vmem:[#allocation8 + $0x18] sm:$0xff] %v317_v51  ;;  %341 = vst [vmem:[#allocation8 + $0x58] sm:$0xff] %v325_v52 }
 0x124   :  { %332 = vst [vmem:[#allocation8 + $0x10] sm:$0xff] %v316_v55  ;;  %340 = vst [vmem:[#allocation8 + $0x50] sm:$0xff] %v324_v56  ;;  %v437_v57 = vpop.f32.mrb[4].mxu0  ;;  %v449_v58 = vpop.f32.mrb[4].mxu1 }
 0x125   :  { %v319_v59 = vadd.f32 %v437_v57, %v364_v40  ;;  %v327_v60 = vadd.f32 %v449_v58, %v364_v40  ;;  %v197_v61 = vpop.f32.mrb[5].mxu0  ;;  %v237_v62 = vpop.f32.mrb[5].mxu1 }
 0x126   :  { %v318_v63 = vadd.f32 %v364_v40, %v197_v61  ;;  %v326_v0 = vadd.f32 %v364_v40, %v237_v62 }
 0x127   :  { %335 = vst [vmem:[#allocation8 + $0x28] sm:$0xff] %v319_v59  ;;  %343 = vst [vmem:[#allocation8 + $0x68] sm:$0xff] %v327_v60 }
 0x128   :  { %334 = vst [vmem:[#allocation8 + $0x20] sm:$0xff] %v318_v63  ;;  %342 = vst [vmem:[#allocation8 + $0x60] sm:$0xff] %v326_v0  ;;  %v440_v1 = vpop.f32.mrb[6].mxu0  ;;  %v452_v2 = vpop.f32.mrb[6].mxu1 }
 0x129   :  { %v321_v3 = vadd.f32 %v440_v1, %v364_v40  ;;  %v329_v4 = vadd.f32 %v452_v2, %v364_v40  ;;  %v207_v5 = vpop.f32.mrb[7].mxu0  ;;  %v247_v6 = vpop.f32.mrb[7].mxu1 }
 0x12a   :  { %v320_v7 = vadd.f32 %v364_v40, %v207_v5  ;;  %v328_v8 = vadd.f32 %v364_v40, %v247_v6 }
 0x12b   :  { %337 = vst [vmem:[#allocation8 + $0x38] sm:$0xff] %v321_v3  ;;  %345 = vst [vmem:[#allocation8 + $0x78] sm:$0xff] %v329_v4 }
 0x12c   :  { %336 = vst [vmem:[#allocation8 + $0x30] sm:$0xff] %v320_v7  ;;  %344 = vst [vmem:[#allocation8 + $0x70] sm:$0xff] %v328_v8 }
 0x12d   :  { %561 = shalt.err (!%p558_p6)
}
 0x12e   :  { %s562_s15 = scalar_lea.hbm %s654_s3, 2048 }
 0x12f   :  { %p563_p7 = scmp.ne.s32.totalorder %s654_s3, %s562_s15  ;;  %p566_p8 = scmp.lt.u32.totalorder %s562_s15, %s654_s3 }
 0x131   :  { %p568_p9 = pnand %p566_p8, %p563_p7 }
 0x133   :  { %571 = shalt.err (!%p568_p9)
}
 0x134   :  { %357 = dma.vmem_to_hbm [thread:$0]  %s352_s11, 2048, %s654_s3, [#allocation5], %s579_s22, %s579_s22, %s580_s23  }
 0x135   :  { %576 = dma.done.wait [#allocation5], 2048  }
 0x136   :  { %577 = vsyncadd [#allocation5], 4294965248 }
 0x137   :  { %361 = vsyncpa [#allocation4], 1 }
 0x138   :  { %362 = vsyncpa [#allocation7], 1 }
 0x139   :  { %363 = vsyncpa [#allocation5], 1 }

</bundles_post_ra>
